<compile_context>
chip_gen: v7x
topology: tpu7x:2x2x1
jax: 0.10.0
libtpu: 0.0.40
codegen_flags: <defaults>
</compile_context>

<pallas_src>
import functools

import jax
import jax.numpy as jnp
from jax.experimental import pallas as pl
from jax.experimental.pallas import tpu as pltpu


# ----------------------------------------------------------------------------
# Pallas kernel: full forward pass of SocialRungeKuttaStepLayer
# ----------------------------------------------------------------------------
def _hkb_step_kernel(
    # python constants baked at trace time (module parameters)
    coupling_weight,          # agent_coupling
    anti_coupling_weight,     # agent_coupling / k
    decay_rate,               # social_weight_decay_rate
    agent_id,                 # int
    # --- refs (inputs, all VMEM) ---
    coupling_ref,             # (2, 5, 5): [phase_coupling_matrix, anti_phase_coupling_matrix]
    osc_ref,                  # (3, 5, 1): [input, phases, 2*pi*freq] as columns
    phases_row_ref,           # (1, 5)   : phases as a row
    agent_ref,                # (2, N)   : [angles, distances_to_self] as rows
    # --- refs (outputs) ---
    out_ref,                  # (5, 1)
):
    n_osc = out_ref.shape[0]
    n_agents = agent_ref.shape[1]

    # ---------------- MutualInfluenceLayer (in-phase & anti-phase) -------------
    p_col = osc_ref[1]                              # (5, 1)
    p_row = phases_row_ref[...]                     # (1, 5)
    diff = p_col - p_row                            # (5, 5): diff[i, j] = p_i - p_j

    # m[i] = sum_j C[i, j] * sin(mult * (p_i - p_j))   (VPU multiply + XLU lane reduce)
    m1 = jnp.sum(coupling_ref[0] * jnp.sin(diff), axis=1, keepdims=True)        # (5, 1)
    m2 = jnp.sum(coupling_ref[1] * jnp.sin(2.0 * diff), axis=1, keepdims=True)  # (5, 1)

    # ---------------- SocialInfluenceLayer (in-phase & anti-phase) -------------
    ag = agent_ref[...]                             # (2, N)
    angles = ag[0:1, :]                             # (1, N)
    dists = ag[1:2, :]                              # (1, N)  == inter_agent_distances[:, agent_id]

    # self angle = angles[agent_id] via one-hot lane mask (replaces angle_filter matmul)
    lane = jax.lax.broadcasted_iota(jnp.int32, (1, n_agents), 1)
    a_self = jnp.sum(jnp.where(lane == agent_id, angles, 0.0),
                     axis=1, keepdims=True)         # (1, 1)
    ang_diff = a_self - angles                      # (1, N)

    decay = jnp.exp(-decay_rate * dists)            # (1, N)  (EUP)

    # scalar weights hoisted out of the reductions
    s1 = coupling_weight * jnp.sum(decay * jnp.sin(ang_diff), axis=1, keepdims=True)
    s2 = anti_coupling_weight * jnp.sum(decay * jnp.sin(2.0 * ang_diff), axis=1, keepdims=True)
    social = s1 + s2                                # (1, 1)

    # ---------------- Final combine --------------------------------------------
    # base = 2*pi*freq + input - m1 - m2 ; social only affects oscillator index 4
    base = osc_ref[2] + osc_ref[0] - m1 - m2        # (5, 1)
    osc_idx = jax.lax.broadcasted_iota(jnp.int32, (n_osc, 1), 0)
    social_mask = (osc_idx == n_osc - 1).astype(jnp.float32)   # 1 at oscillator 4
    out_ref[...] = base - social_mask * social


# ----------------------------------------------------------------------------
# Wrapper: parameter construction (glue) + pallas_call
# ----------------------------------------------------------------------------
class SocialRungeKuttaStepLayerPallas:
    N_OSC = 5

    def __init__(self, fs, frequency, phase_coupling, k, agent_coupling,
                 social_weight_decay_rate, n_agents, agent_id):
        f32 = jnp.float32
        f = [float(x) for x in frequency]
        self.frequency_array = jnp.array([f[0], f[0], f[1], f[1], f[2]], f32)
        # hoist the constant 2*pi multiply out of the kernel
        self.two_pi_freq = (2.0 * jnp.pi * self.frequency_array).astype(f32)

        (a_sens, a_ips_l, a_ips_r, a_con_l, a_con_r, a_motor,
         a_soc_s_l, a_soc_s_r, a_soc_m_l, a_soc_m_r) = [float(x) for x in phase_coupling]

        self.phase_coupling_matrix = jnp.array(
            [[0.0,       a_sens,    a_ips_l,   a_con_l,   a_soc_s_l],
             [a_sens,    0.0,       a_con_r,   a_ips_r,   a_soc_s_r],
             [a_ips_l,   a_con_r,   0.0,       a_motor,   a_soc_m_l],
             [a_con_l,   a_ips_r,   a_motor,   0.0,       a_soc_m_r],
             [a_soc_s_l, a_soc_s_r, a_soc_m_l, a_soc_m_r, 0.0]],
            f32,
        )
        self.anti_phase_coupling_matrix = self.phase_coupling_matrix / float(k)
        # single constant operand for the kernel: [C, C/k]
        self.coupling_stack = jnp.stack(
            [self.phase_coupling_matrix, self.anti_phase_coupling_matrix])   # (2, 5, 5)

        # module parameters baked into the kernel at trace time
        # (they are fixed at __init__; if they had to vary at runtime they would
        #  go through SMEM / scalar prefetch instead to avoid recompiles)
        self.coupling_weight = float(agent_coupling)
        self.anti_coupling_weight = float(agent_coupling) / float(k)
        self.decay_rate = float(social_weight_decay_rate)
        self.n_agents = int(n_agents)
        self.agent_id = int(agent_id)
        self.fs = fs

        # filters kept ONLY for the pure-JAX reference (mirror of the PyTorch module);
        # the kernel does not use them.
        self.angle_filter = jnp.zeros((self.n_agents, self.n_agents), f32).at[:, self.agent_id].set(1.0)
        self.distance_filter = jnp.zeros((self.n_agents,), f32).at[self.agent_id].set(1.0)
        self.oscillator_filter = jnp.zeros((self.N_OSC,), f32).at[4].set(1.0)

        self._forward = jax.jit(self._forward_impl)

    def _forward_impl(self, input_, phases, angles, inter_agent_distances):
        f32 = jnp.float32
        n_osc, n_ag = self.N_OSC, self.n_agents

        inp = jnp.asarray(input_, f32).reshape(n_osc)
        ph = jnp.asarray(phases, f32).reshape(n_osc)
        ang = jnp.asarray(angles, f32).reshape(n_ag)
        dist = jnp.asarray(inter_agent_distances, f32).reshape(n_ag, n_ag)

        # Operand packing (layout plumbing only -- no compute hoisted out of the kernel):
        osc_cols = jnp.stack([inp, ph, self.two_pi_freq])[:, :, None]     # (3, 5, 1)
        phases_row = ph.reshape(1, n_osc)                                 # (1, 5)
        agent_rows = jnp.stack([ang, dist[:, self.agent_id]])             # (2, N)

        kernel = functools.partial(
            _hkb_step_kernel,
            self.coupling_weight, self.anti_coupling_weight,
            self.decay_rate, self.agent_id,
        )
        vmem = pl.BlockSpec(memory_space=pltpu.MemorySpace.VMEM)

        out = pl.pallas_call(
            kernel,
            out_shape=jax.ShapeDtypeStruct((n_osc, 1), f32),
            in_specs=[vmem] * 4,
            out_specs=vmem,
        )(self.coupling_stack, osc_cols, phases_row, agent_rows)
        return out.reshape(n_osc)

    def __call__(self, input_, phases, angles, inter_agent_distances):
        return self._forward(input_, phases, angles, inter_agent_distances)

    # pure-JAX reference (mirrors the PyTorch module) for verification
    def reference(self, input_, phases, angles, inter_agent_distances):
        f32 = jnp.float32
        p = jnp.asarray(phases, f32)
        diff = p[:, None] - p[None, :]
        m1 = jnp.sum(self.phase_coupling_matrix * jnp.sin(1.0 * diff), axis=1)
        m2 = jnp.sum(self.anti_phase_coupling_matrix * jnp.sin(2.0 * diff), axis=1)

        a = jnp.asarray(angles, f32)
        d = jnp.asarray(inter_agent_distances, f32)
        self_angles = self.angle_filter @ a
        dists = d @ self.distance_filter
        s1 = jnp.sum(self.coupling_weight * jnp.exp(-self.decay_rate * dists)
                     * jnp.sin(1.0 * (self_angles - a)))
        s2 = jnp.sum(self.anti_coupling_weight * jnp.exp(-self.decay_rate * dists)
                     * jnp.sin(2.0 * (self_angles - a)))
        social = self.oscillator_filter * (s1 + s2)
        return (2.0 * jnp.pi * self.frequency_array + jnp.asarray(input_, f32)
                - m1 - m2 - social)


if __name__ == "__main__":
    # Deterministic module parameters (synthetic, matching __init__ shapes).
    fs = 100.0
    frequency = [1.0, 2.0, 3.0]                                   # -> freq array of 5
    phase_coupling = [0.5, 0.4, 0.3, 0.2, 0.1, 0.6, 0.25, 0.15, 0.35, 0.45]
    k = 2.0
    agent_coupling = 0.8
    social_weight_decay_rate = 0.1
    n_agents = 4
    agent_id = 1

    layer = SocialRungeKuttaStepLayerPallas(
        fs, frequency, phase_coupling, k, agent_coupling,
        social_weight_decay_rate, n_agents, agent_id,
    )

    # Deterministic example inputs.
    key = jax.random.PRNGKey(0)
    k1, k2, k3, k4 = jax.random.split(key, 4)
    input_ = jax.random.normal(k1, (5,), jnp.float32)
    phases = jax.random.uniform(k2, (5,), jnp.float32, 0.0, 2.0 * jnp.pi)
    angles = jax.random.uniform(k3, (n_agents,), jnp.float32, -jnp.pi, jnp.pi)
    inter_agent_distances = jax.random.uniform(k4, (n_agents, n_agents), jnp.float32, 0.5, 5.0)

    out = layer(input_, phases, angles, inter_agent_distances)
    out = jax.block_until_ready(out)

    ref = layer.reference(input_, phases, angles, inter_agent_distances)
    assert out.shape == (5,)
    assert jnp.allclose(out, ref, atol=1e-4, rtol=1e-4), (out, ref)

    print("KERNEL_OK")
</pallas_src>

<mosaic_0001>
module attributes {stable_mosaic.version = 11 : i64} {
  func.func @_hkb_step_kernel(%arg0: memref<2x5x5xf32, #tpu.memory_space<vmem>>, %arg1: memref<3x5x1xf32, #tpu.memory_space<vmem>>, %arg2: memref<1x5xf32, #tpu.memory_space<vmem>>, %arg3: memref<2x4xf32, #tpu.memory_space<vmem>>, %arg4: memref<5x1xf32, #tpu.memory_space<vmem>>) attributes {dimension_semantics = [], scalar_prefetch = 0 : i64, scratch_operands = 0 : i64, tpu.core_type = #tpu.core_type<tc>} {
    %c1 = arith.constant 1 : index
    %c0 = arith.constant 0 : index
    %c0_0 = arith.constant 0 : index
    %0 = vector.load %arg1[%c1, %c0, %c0_0] : memref<3x5x1xf32, #tpu.memory_space<vmem>>, vector<1x5x1xf32>
    %1 = vector.shape_cast %0 : vector<1x5x1xf32> to vector<5x1xf32>
    %c0_1 = arith.constant 0 : index
    %c0_2 = arith.constant 0 : index
    %2 = vector.load %arg2[%c0_1, %c0_2] : memref<1x5xf32, #tpu.memory_space<vmem>>, vector<1x5xf32>
    %3 = vector.broadcast %1 : vector<5x1xf32> to vector<5x5xf32>
    %4 = vector.broadcast %2 : vector<1x5xf32> to vector<5x5xf32>
    %5 = arith.subf %3, %4 : vector<5x5xf32>
    %c0_3 = arith.constant 0 : index
    %c0_4 = arith.constant 0 : index
    %c0_5 = arith.constant 0 : index
    %6 = vector.load %arg0[%c0_3, %c0_4, %c0_5] : memref<2x5x5xf32, #tpu.memory_space<vmem>>, vector<1x5x5xf32>
    %7 = vector.shape_cast %6 : vector<1x5x5xf32> to vector<5x5xf32>
    %8 = math.sin %5 : vector<5x5xf32>
    %9 = arith.mulf %7, %8 : vector<5x5xf32>
    %cst = arith.constant dense<0.000000e+00> : vector<5xf32>
    %10 = vector.multi_reduction <add>, %9, %cst [1] : vector<5x5xf32> to vector<5xf32>
    %11 = vector.shape_cast %10 : vector<5xf32> to vector<5x1xf32>
    %c1_6 = arith.constant 1 : index
    %c0_7 = arith.constant 0 : index
    %c0_8 = arith.constant 0 : index
    %12 = vector.load %arg0[%c1_6, %c0_7, %c0_8] : memref<2x5x5xf32, #tpu.memory_space<vmem>>, vector<1x5x5xf32>
    %13 = vector.shape_cast %12 : vector<1x5x5xf32> to vector<5x5xf32>
    %cst_9 = arith.constant 2.000000e+00 : f32
    %14 = vector.broadcast %cst_9 : f32 to vector<5x5xf32>
    %15 = arith.mulf %14, %5 : vector<5x5xf32>
    %16 = math.sin %15 : vector<5x5xf32>
    %17 = arith.mulf %13, %16 : vector<5x5xf32>
    %cst_10 = arith.constant dense<0.000000e+00> : vector<5xf32>
    %18 = vector.multi_reduction <add>, %17, %cst_10 [1] : vector<5x5xf32> to vector<5xf32>
    %19 = vector.shape_cast %18 : vector<5xf32> to vector<5x1xf32>
    %c0_11 = arith.constant 0 : index
    %c0_12 = arith.constant 0 : index
    %20 = vector.load %arg3[%c0_11, %c0_12] : memref<2x4xf32, #tpu.memory_space<vmem>>, vector<2x4xf32>
    %21 = vector.extract_strided_slice %20 {offsets = [0, 0], sizes = [1, 4], strides = [1, 1]} : vector<2x4xf32> to vector<1x4xf32>
    %22 = vector.extract_strided_slice %20 {offsets = [1, 0], sizes = [1, 4], strides = [1, 1]} : vector<2x4xf32> to vector<1x4xf32>
    %23 = tpu.iota {dimensions = array<i32: 1>} : vector<1x4xi32>
    %c1_i32 = arith.constant 1 : i32
    %24 = vector.broadcast %c1_i32 : i32 to vector<1x4xi32>
    %25 = arith.cmpi eq, %23, %24 : vector<1x4xi32>
    %cst_13 = arith.constant 0.000000e+00 : f32
    %26 = vector.broadcast %cst_13 : f32 to vector<1x4xf32>
    %27 = arith.select %25, %21, %26 : vector<1x4xi1>, vector<1x4xf32>
    %cst_14 = arith.constant dense<0.000000e+00> : vector<1xf32>
    %28 = vector.multi_reduction <add>, %27, %cst_14 [1] : vector<1x4xf32> to vector<1xf32>
    %29 = vector.shape_cast %28 : vector<1xf32> to vector<1x1xf32>
    %30 = vector.broadcast %29 : vector<1x1xf32> to vector<1x4xf32>
    %31 = arith.subf %30, %21 : vector<1x4xf32>
    %cst_15 = arith.constant -1.000000e-01 : f32
    %32 = vector.broadcast %cst_15 : f32 to vector<1x4xf32>
    %33 = arith.mulf %32, %22 : vector<1x4xf32>
    %34 = math.exp %33 : vector<1x4xf32>
    %35 = math.sin %31 : vector<1x4xf32>
    %36 = arith.mulf %34, %35 : vector<1x4xf32>
    %cst_16 = arith.constant dense<0.000000e+00> : vector<1xf32>
    %37 = vector.multi_reduction <add>, %36, %cst_16 [1] : vector<1x4xf32> to vector<1xf32>
    %38 = vector.shape_cast %37 : vector<1xf32> to vector<1x1xf32>
    %cst_17 = arith.constant 8.000000e-01 : f32
    %39 = vector.broadcast %cst_17 : f32 to vector<1x1xf32>
    %40 = arith.mulf %39, %38 : vector<1x1xf32>
    %cst_18 = arith.constant 2.000000e+00 : f32
    %41 = vector.broadcast %cst_18 : f32 to vector<1x4xf32>
    %42 = arith.mulf %41, %31 : vector<1x4xf32>
    %43 = math.sin %42 : vector<1x4xf32>
    %44 = arith.mulf %34, %43 : vector<1x4xf32>
    %cst_19 = arith.constant dense<0.000000e+00> : vector<1xf32>
    %45 = vector.multi_reduction <add>, %44, %cst_19 [1] : vector<1x4xf32> to vector<1xf32>
    %46 = vector.shape_cast %45 : vector<1xf32> to vector<1x1xf32>
    %cst_20 = arith.constant 4.000000e-01 : f32
    %47 = vector.broadcast %cst_20 : f32 to vector<1x1xf32>
    %48 = arith.mulf %47, %46 : vector<1x1xf32>
    %49 = arith.addf %40, %48 : vector<1x1xf32>
    %c2 = arith.constant 2 : index
    %c0_21 = arith.constant 0 : index
    %c0_22 = arith.constant 0 : index
    %50 = vector.load %arg1[%c2, %c0_21, %c0_22] : memref<3x5x1xf32, #tpu.memory_space<vmem>>, vector<1x5x1xf32>
    %51 = vector.shape_cast %50 : vector<1x5x1xf32> to vector<5x1xf32>
    %c0_23 = arith.constant 0 : index
    %c0_24 = arith.constant 0 : index
    %c0_25 = arith.constant 0 : index
    %52 = vector.load %arg1[%c0_23, %c0_24, %c0_25] : memref<3x5x1xf32, #tpu.memory_space<vmem>>, vector<1x5x1xf32>
    %53 = vector.shape_cast %52 : vector<1x5x1xf32> to vector<5x1xf32>
    %54 = arith.addf %51, %53 : vector<5x1xf32>
    %55 = arith.subf %54, %11 : vector<5x1xf32>
    %56 = arith.subf %55, %19 : vector<5x1xf32>
    %57 = tpu.iota {dimensions = array<i32: 0>} : vector<5x1xi32>
    %c4_i32 = arith.constant 4 : i32
    %58 = vector.broadcast %c4_i32 : i32 to vector<5x1xi32>
    %59 = arith.cmpi eq, %57, %58 : vector<5x1xi32>
    %60 = arith.extui %59 : vector<5x1xi1> to vector<5x1xi32>
    %61 = arith.sitofp %60 : vector<5x1xi32> to vector<5x1xf32>
    %62 = vector.broadcast %49 : vector<1x1xf32> to vector<5x1xf32>
    %63 = arith.mulf %61, %62 : vector<5x1xf32>
    %64 = arith.subf %56, %63 : vector<5x1xf32>
    %c0_26 = arith.constant 0 : index
    %c0_27 = arith.constant 0 : index
    %65 = vector.load %arg4[%c0_26, %c0_27] : memref<5x1xf32, #tpu.memory_space<vmem>>, vector<5x1xf32>
    tpu.vector_store %arg4[%c0_26, %c0_27], %64 {strides = array<i32>} : memref<5x1xf32, #tpu.memory_space<vmem>>, vector<5x1xf32>,
    return
  }
}

</mosaic_0001>

<bundles_post_ra>
// kernel: _forward_impl.1
= control target key start
LH: loop header
LB: loop body
LE: loop exit
PB: predicated region body
PF: predicated region fallthrough
CT: control target
= control target key end

     0   :  { %v254_v0 = vlaneseq  ;;  %v580_v1 = vmov 0   ;;  %vm258_vm0 = vcmask 24576   ;;  %v581_v34 = vmov 683565275   ;;  %s957_s3 = inlined_call_operand.vmem [shape: f32[2,4], index: 3, kind: input, shape index: {}]   ;;  %s958_s1 = inlined_call_operand.vmem [shape: f32[3,5,1], index: 1, kind: input, shape index: {}]   ;;  %s959_s2 = inlined_call_operand.vmem [shape: f32[1,5], index: 2, kind: input, shape index: {}]   ;;  %s960_s0 = inlined_call_operand.vmem [shape: f32[2,5,5], index: 0, kind: input, shape index: {}]   ;;  %s961_s4 = inlined_call_operand.vmem [shape: f32[5,1], index: 4, kind: output, shape index: {}]  }
   0x1   :  { %561 = vset.pattern.permute.xlu0 %v580_v1  ;;  %v616_v2 = vld [vmem:[%s957_s3] sm:$0x3]  ;;  %v516_v6 = vld [vmem:[%s958_s1 + $0x8] sm:$0x1f]  ;;  %v582_v36 = vmov 2475754826  }
   0x2   :  { %v255_v3 = vand.u32 127, %v254_v0  ;;  %v517_v13 = vld [vmem:[%s959_s2] ss:$0 sm:$0xff]  ;;  %v583_v38 = vmov 2131351028  }
   0x3   :  { %v584_v43 = vmov 2102212464   ;;  %v585_v46 = vmov 920167782   ;;  %v586_v49 = vmov 1326507024  }
   0x4   :  { %vm256_vm1 = vcmp.eq.s32.totalorder %v255_v3, 1 }
   0x5   :  { %v257_v4 = vsel %vm256_vm1, %v616_v2, 0.0 }
   0x6   :  { %v259_v5 = vsel %vm258_vm0, %v257_v4, 0.0 }
   0x7   :  { %260 = vadd.xlane.f32.xlu0 %v259_v5 }
  0x1d   :  { %22 = vperm.xlu0 %561, %v516_v6  }
  0x94   :  { %v261_v7 = vpop.xlane.xlu0 %260 }
  0x95   :  { %v624_v8 = vsub.f32 %v261_v7, %v616_v2 }
  0x97   :  { %v269_v9 = vand.u32 2139095040, %v624_v8  ;;  %v266_v10 = vand.u32 2147483647, %v624_v8  ;;  %v629_v11 = vmul.f32 2.0, %v624_v8 }
  0x99   :  { %v270_v12 = vshrl.u32 %v269_v9, 23  ;;  %v383_v14 = vand.u32 2139095040, %v629_v11  ;;  %v273_v16 = vand.u32 8388607, %v266_v10  ;;  %v380_v21 = vand.u32 2147483647, %v629_v11 }
  0x9b   :  { %v527_v15 = vadd.s32 4294967169, %v270_v12  ;;  %v384_v18 = vshrl.u32 %v383_v14, 23  ;;  %v274_v24 = vor.u32 8388608, %v273_v16  ;;  %v643_v29 = vand.u32 8388607, %v380_v21 }
  0x9c   :  { %v23_v17 = vpop.permute.xlu0 %22 }
  0x9d   :  { %v276_v19 = vadd.s32 1, %v527_v15  ;;  %v637_v20 = vsub.f32 %v23_v17, %v517_v13  ;;  %v531_v22 = vadd.s32 4294967169, %v384_v18  ;;  %v645_v33 = vshll.u32 %v274_v24, 8 }
  0x9e   :  { %v388_v18 = vor.u32 8388608, %v643_v29 }
  0x9f   :  { %vm277_vm2 = vcmp.gt.s32.totalorder %v276_v19, 0  ;;  %v36_v23 = vand.u32 2139095040, %v637_v20  ;;  %v390_v26 = vadd.s32 1, %v531_v22 }
  0xa0   :  { %v278_v25 = vsel %vm277_vm2, %v276_v19, 0 }
  0xa1   :  { %v280_v27 = vand.u32 31, %v278_v25  ;;  %v37_v28 = vshrl.u32 %v36_v23, 23  ;;  %v279_v30 = vshrl.u32 %v278_v25, 5  ;;  %vm391_vm3 = vcmp.gt.s32.totalorder %v390_v26, 0 }
  0xa2   :  { %v392_v7 = vsel %vm391_vm3, %v390_v26, 0 }
  0xa3   :  { %v281_v31 = vsub.s32 32, %v280_v27  ;;  %v518_v32 = vadd.s32 4294967169, %v37_v28  ;;  %v283_v35 = vshll.u32 %v581_v34, %v280_v27  ;;  %v286_v37 = vshll.u32 %v582_v36, %v280_v27 }
  0xa4   :  { %v289_v39 = vshll.u32 %v583_v38, %v280_v27  ;;  %v292_v44 = vshll.u32 %v584_v43, %v280_v27  ;;  %v295_v48 = vshll.u32 %v585_v46, %v280_v27  ;;  %vm298_vm5 = vcmp.lt.s32.totalorder %v279_v30, 1 }
  0xa5   :  { %v43_v40 = vadd.s32 1, %v518_v32  ;;  %v284_v41 = vshrl.u32 %v582_v36, %v281_v31  ;;  %v287_v42 = vshrl.u32 %v583_v38, %v281_v31  ;;  %v290_v45 = vshrl.u32 %v584_v43, %v281_v31 }
  0xa6   :  { %v293_v47 = vshrl.u32 %v585_v46, %v281_v31  ;;  %v296_v50 = vshrl.u32 %v586_v49, %v281_v31  ;;  %v282_v51 = vshrl.u32 %v581_v34, %v281_v31  ;;  %vm300_vm6 = vcmp.lt.s32.totalorder %v279_v30, 3 }
  0xa7   :  { %vm44_vm4 = vcmp.gt.s32.totalorder %v43_v40, 0  ;;  %v285_v52 = vor.u32 %v284_v41, %v283_v35  ;;  %v288_v53 = vor.u32 %v287_v42, %v286_v37  ;;  %v291_v54 = vor.u32 %v290_v45, %v289_v39 }
  0xa8   :  { %v294_v55 = vor.u32 %v293_v47, %v292_v44  ;;  %v297_v56 = vor.u32 %v296_v50, %v295_v48  ;;  %v658_v57 = vsel %vm44_vm4, %v43_v40, 0  ;;  %vm301_vm7 = vcmp.lt.s32.totalorder %v279_v30, 4 }
  0xa9   :  { %v302_v58 = vsel %vm298_vm5, %v282_v51, %v285_v52  ;;  %v303_v59 = vsel %vm301_vm7, %v291_v54, 2102212464  ;;  %v306_v60 = vsel %vm298_vm5, %v285_v52, %v288_v53  ;;  %v310_v62 = vsel %vm298_vm5, %v288_v53, %v291_v54 }
  0xaa   :  { %v307_v61 = vsel %vm301_vm7, %v294_v55, 920167782  ;;  %vm299_vm8 = vcmp.lt.s32.totalorder %v279_v30, 2  ;;  %v304_v63 = vsel %vm300_vm6, %v288_v53, %v303_v59  ;;  %v311_v3 = vsel %vm301_vm7, %v297_v56, 1326507024 }
  0xab   :  { %v308_v1 = vsel %vm300_vm6, %v291_v54, %v307_v61  ;;  %v661_v4 = vand.u32 31, %v658_v57  ;;  %v312_v6 = vsel %vm300_vm6, %v294_v55, %v311_v3  ;;  %v305_v9 = vsel %vm299_vm8, %v302_v58, %v304_v63 }
  0xac   :  { %v309_v5 = vsel %vm299_vm8, %v306_v60, %v308_v1  ;;  %v313_v12 = vsel %vm299_vm8, %v310_v62, %v312_v6  ;;  %v394_v17 = vand.u32 31, %v392_v7  ;;  %v321_v22 = vmul.u32 %v645_v33, %v305_v9 }
  0xad   :  { %v665_v13 = vmul.u32.u64.low %v645_v33, %v309_v5  ;;  %v666_v14 = vmul.u32.u64.high %v645_v33, %v309_v5, %v665_v13  ;;  %v670_v15 = vmul.u32.u64.low %v645_v33, %v313_v12  ;;  %v671_v16 = vmul.u32.u64.high %v645_v33, %v313_v12, %v670_v15 }
  0xae   :  { %v675_v19 = vsub.s32 32, %v661_v4  ;;  %v393_v23 = vshrl.u32 %v392_v7, 5  ;;  %v395_v24 = vsub.s32 32, %v394_v17  ;;  %v397_v26 = vshll.u32 %v581_v34, %v394_v17 }
  0xaf   :  { %v324_v25 = vadd.s32 1, %v666_v14  ;;  %v400_v27 = vshll.u32 %v582_v36, %v394_v17  ;;  %v403_v28 = vshll.u32 %v583_v38, %v394_v17  ;;  %vm323_vm9 = vc.u32 %v671_v16, %v665_v13 }
  0xb0   :  { %v398_v29 = vshrl.u32 %v582_v36, %v395_v24  ;;  %v406_v30 = vshll.u32 %v584_v43, %v394_v17  ;;  %v409_v31 = vshll.u32 %v585_v46, %v394_v17  ;;  %v401_v33 = vshrl.u32 %v583_v38, %v395_v24 }
  0xb1   :  { %v325_v32 = vsel %vm323_vm9, %v324_v25, %v666_v14  ;;  %v404_v35 = vshrl.u32 %v584_v43, %v395_v24  ;;  %v407_v37 = vshrl.u32 %v585_v46, %v395_v24  ;;  %v410_v41 = vshrl.u32 %v586_v49, %v395_v24 }
  0xb2   :  { %v326_v39 = vadd.s32 %v325_v32, %v321_v22  ;;  %v399_v40 = vor.u32 %v398_v29, %v397_v26  ;;  %vm412_vm10 = vcmp.lt.s32.totalorder %v393_v23, 1  ;;  %v396_v42 = vshrl.u32 %v581_v34, %v395_v24 }
  0xb3   :  { %v402_v44 = vor.u32 %v401_v33, %v400_v27  ;;  %v405_v45 = vor.u32 %v404_v35, %v403_v28  ;;  %v408_v47 = vor.u32 %v407_v37, %v406_v30  ;;  %v411_v50 = vor.u32 %v410_v41, %v409_v31 }
  0xb4   :  { %v327_v48 = vadd.s32 536870912, %v326_v39  ;;  %vm414_vm11 = vcmp.lt.s32.totalorder %v393_v23, 3  ;;  %vm415_vm12 = vcmp.lt.s32.totalorder %v393_v23, 4  ;;  %vm413_vm13 = vcmp.lt.s32.totalorder %v393_v23, 2 }
  0xb5   :  { %v417_v51 = vsel %vm415_vm12, %v405_v45, 2102212464  ;;  %v420_v52 = vsel %vm412_vm10, %v399_v40, %v402_v44  ;;  %v421_v53 = vsel %vm415_vm12, %v408_v47, 920167782  ;;  %v424_v54 = vsel %vm412_vm10, %v402_v44, %v405_v45 }
  0xb6   :  { %v695_v55 = vshrl.u32 %v327_v48, 30  ;;  %v422_v56 = vsel %vm414_vm11, %v405_v45, %v421_v53  ;;  %v425_v58 = vsel %vm415_vm12, %v411_v50, 1326507024  ;;  %v428_v61 = vshll.u32 %v388_v18, 8 }
  0xb7   :  { %v423_v59 = vsel %vm413_vm13, %v420_v52, %v422_v56  ;;  %v426_v60 = vsel %vm414_vm11, %v408_v47, %v425_v58  ;;  %v33_v62 = vand.u32 2147483647, %v637_v20  ;;  %v416_v1 = vsel %vm412_vm10, %v396_v42, %v399_v40 }
  0xb8   :  { %v329_v63 = vshll.u32 %v695_v55, 30  ;;  %v418_v3 = vsel %vm414_vm11, %v402_v44, %v417_v51  ;;  %v427_v5 = vsel %vm413_vm13, %v424_v54, %v426_v60  ;;  %v53_v15 = vshll.u32 %v582_v36, %v661_v4 }
  0xb9   :  { %v705_v6 = vmul.u32.u64.low %v428_v61, %v427_v5  ;;  %v706_v7 = vmul.u32.u64.high %v428_v61, %v427_v5, %v705_v6  ;;  %v708_v9 = vmul.u32.u64.low %v428_v61, %v423_v59  ;;  %v709_v12 = vmul.u32.u64.high %v428_v61, %v423_v59, %v708_v9 }
  0xba   :  { %v712_v14 = vsub.s32 %v326_v39, %v329_v63  ;;  %v54_v17 = vshrl.u32 %v583_v38, %v675_v19  ;;  %v419_v18 = vsel %vm413_vm13, %v416_v1, %v418_v3  ;;  %v56_v22 = vshll.u32 %v583_v38, %v661_v4 }
  0xbb   :  { %v57_v24 = vshrl.u32 %v584_v43, %v675_v19  ;;  %v59_v25 = vshll.u32 %v584_v43, %v661_v4  ;;  %v50_v27 = vshll.u32 %v581_v34, %v661_v4  ;;  %v51_v28 = vshrl.u32 %v582_v36, %v675_v19 }
  0xbc   :  { %v332_v26 = vsub.s32 0, %v712_v14  ;;  %v60_v23 = vshrl.u32 %v585_v46, %v675_v19  ;;  %v733_v29 = vshrl.u32 %v658_v57, 5  ;;  %vm437_vm14 = vc.u32 %v706_v7, %v708_v9 }
  0xbd   :  { %v438_v30 = vadd.s32 1, %v709_v12  ;;  %v40_v31 = vand.u32 8388607, %v33_v62  ;;  %v435_v33 = vmul.u32 %v428_v61, %v419_v18  ;;  %v55_v35 = vor.u32 %v54_v17, %v53_v15 }
  0xbe   :  { %v528_v32 = vmin.u32 %v332_v26, %v712_v14  ;;  %v62_v37 = vshll.u32 %v585_v46, %v661_v4  ;;  %v58_v40 = vor.u32 %v57_v24, %v56_v22  ;;  %v61_v57 = vor.u32 %v60_v23, %v59_v25 }
  0xbf   :  { %v439_v39 = vsel %vm437_vm14, %v438_v30, %v709_v12  ;;  %v63_v41 = vshrl.u32 %v586_v49, %v675_v19  ;;  %v263_v42 = vmul.f32 -0.1, %v616_v2  ;;  %v52_v45 = vor.u32 %v51_v28, %v50_v27 }
  0xc0   :  { %v334_v44 = vclz %v528_v32  ;;  %v748_v47 = vmul.f32 2.0, %v637_v20  ;;  %v440_v48 = vadd.s32 %v439_v39, %v435_v33  ;;  %v41_v50 = vor.u32 8388608, %v40_v31 }
  0xc1   :  { %v49_v51 = vshrl.u32 %v581_v34, %v675_v19  ;;  %v64_v4 = vor.u32 %v63_v41, %v62_v37  ;;  %v322_v52 = vadd.s32 %v665_v13, %v671_v16  ;;  %vm65_vm15 = vcmp.lt.s32.totalorder %v733_v29, 1 }
  0xc2   :  { %v529_v53 = vadd.s32 4294967294, %v334_v44  ;;  %vm68_vm0 = vcmp.lt.s32.totalorder %v733_v29, 4  ;;  %v441_v2 = vadd.s32 536870912, %v440_v48  ;;  %vm67_vm1 = vcmp.lt.s32.totalorder %v733_v29, 3 }
  0xc3   :  { %v74_v54 = vsel %vm68_vm0, %v61_v57, 920167782  ;;  %v77_v56 = vsel %vm65_vm15, %v55_v35, %v58_v40  ;;  %v73_v19 = vsel %vm65_vm15, %v52_v45, %v55_v35  ;;  %v78_v16 = vsel %vm68_vm0, %v64_v4, 1326507024 }
  0xc4   :  { %vm530_vm2 = vcmp.lt.s32.totalorder %v529_v53, 0  ;;  %v75_v13 = vsel %vm67_vm1, %v58_v40, %v74_v54  ;;  %v442_v59 = vshrl.u32 %v441_v2, 30  ;;  %vm66_vm3 = vcmp.lt.s32.totalorder %v733_v29, 2 }
  0xc5   :  { %v337_v58 = vsel %vm530_vm2, 0, %v529_v53  ;;  %v79_v60 = vsel %vm67_vm1, %v61_v57, %v78_v16  ;;  %v352_v1 = vsub.s32 4, %v695_v55  ;;  %v70_v6 = vsel %vm68_vm0, %v58_v40, 2102212464 }
  0xc6   :  { %v338_v61 = vsub.s32 32, %v337_v58  ;;  %v342_v63 = vsub.s32 4294967266, %v337_v58  ;;  %v80_v3 = vsel %vm66_vm3, %v77_v56, %v79_v60  ;;  %v443_v5 = vshll.u32 %v442_v59, 30 }
  0xc7   :  { %v76_v12 = vsel %vm66_vm3, %v73_v19, %v75_v13  ;;  %v81_v15 = vshll.u32 %v41_v50, 8  ;;  %v339_v17 = vshll.u32 %v712_v14, %v337_v58  ;;  %v148_v24 = vand.u32 2139095040, %v748_v47 }
  0xc8   :  { %v340_v18 = vshrl.u32 %v322_v52, %v338_v61  ;;  %v343_v22 = vadd.s32 127, %v342_v63  ;;  %vm268_vm4 = vcmp.lt.s32.totalorder %v624_v8, 0  ;;  %v444_v25 = vsub.s32 %v440_v48, %v443_v5 }
  0xc9   :  { %v780_v26 = vmul.u32.u64.low %v81_v15, %v80_v3  ;;  %v781_v27 = vmul.u32.u64.high %v81_v15, %v80_v3, %v780_v26  ;;  %v353_v30 = vsel %vm268_vm4, %v352_v1, %v695_v55  ;;  %v69_v31 = vsel %vm65_vm15, %v49_v51, %v52_v45 }
  0xca   :  { %v341_v28 = vor.u32 %v340_v18, %v339_v17  ;;  %v344_v23 = vshll.u32 %v343_v22, 23  ;;  %v446_v14 = vsub.s32 0, %v444_v25  ;;  %v71_v32 = vsel %vm67_vm1, %v55_v35, %v70_v6 }
  0xcb   :  { %v790_v33 = vmul.u32.u64.low %v81_v15, %v76_v12  ;;  %v791_v37 = vmul.u32.u64.high %v81_v15, %v76_v12, %v790_v33  ;;  %vm796_vm5 = vcmp.le.f32.partialorder %v266_v10, 0.7853982  ;;  %v149_v57 = vshrl.u32 %v148_v24, 23 }
  0xcc   :  { %v345_v40 = vor.u32 4788187, %v344_v23  ;;  %v264_v55 = vmul.f32 1.442695, %v263_v42  ;;  %v355_v41 = vsel %vm796_vm5, 0, %v353_v30  ;;  %v532_v44 = vmin.u32 %v446_v14, %v444_v25 }
  0xcd   :  { %v348_v48 = vcvt.s32.f32 %v341_v28  ;;  %v72_v35 = vsel %vm66_vm3, %v69_v31, %v71_v32  ;;  %v523_v50 = vadd.s32 4294967169, %v149_v57  ;;  %vm382_vm6 = vcmp.lt.s32.totalorder %v629_v11, 0 }
  0xce   :  { %v346_v45 = vand.u32 2147483647, %v345_v40  ;;  %v448_v51 = vclz %v532_v44  ;;  %v466_v10 = vsub.s32 4, %v442_v59  ;;  %vm90_vm7 = vc.u32 %v781_v27, %v790_v33 }
  0xcf   :  { %v359_v52 = vadd.s32 3, %v355_v41  ;;  %v91_v42 = vadd.s32 1, %v791_v37  ;;  %v155_v53 = vadd.s32 1, %v523_v50  ;;  %vm810_vm8 = vcmp.le.f32.partialorder %v380_v21, 0.7853982 }
  0xd0   :  { %v349_v4 = vmul.f32 %v348_v48, %v346_v45  ;;  %v533_v29 = vadd.s32 4294967294, %v448_v51  ;;  %v88_v54 = vmul.u32 %v81_v15, %v72_v35  ;;  %v145_v56 = vand.u32 2147483647, %v748_v47 }
  0xd1   :  { %v436_v13 = vadd.s32 %v708_v9, %v706_v7  ;;  %v92_v16 = vsel %vm90_vm7, %v91_v42, %v791_v37  ;;  %vm156_vm9 = vcmp.gt.s32.totalorder %v155_v53, 0  ;;  %v467_v58 = vsel %vm382_vm6, %v466_v10, %v442_v59 }
  0xd2   :  { %v350_v19 = vxor.u32 2147483648, %v349_v4  ;;  %vm534_vm10 = vcmp.lt.s32.totalorder %v533_v29, 0  ;;  %v93_v60 = vadd.s32 %v92_v16, %v88_v54  ;;  %v157_v21 = vsel %vm156_vm9, %v155_v53, 0 }
  0xd3   :  { %v822_v63 = vand.u32 3, %v359_v52  ;;  %v451_v1 = vsel %vm534_vm10, 0, %v533_v29  ;;  %v159_v3 = vand.u32 31, %v157_v21  ;;  %v152_v6 = vand.u32 8388607, %v145_v56 }
  0xd4   :  { %v351_v61 = vsel %vm268_vm4, %v350_v19, %v349_v4  ;;  %v452_v9 = vsub.s32 32, %v451_v1  ;;  %v456_v5 = vsub.s32 4294967266, %v451_v1  ;;  %v469_v59 = vsel %vm810_vm8, 0, %v467_v58 }
  0xd5   :  { %v354_v7 = vsel %vm796_vm5, %v624_v8, %v351_v61  ;;  %v94_v12 = vadd.s32 536870912, %v93_v60  ;;  %v160_v15 = vsub.s32 32, %v159_v3  ;;  %v453_v17 = vshll.u32 %v444_v25, %v451_v1 }
  0xd6   :  { %562 = vcosq.f32 %v354_v7  ;;  %v454_v18 = vshrl.u32 %v436_v13, %v452_v9  ;;  %v457_v22 = vadd.s32 127, %v456_v5  ;;  %v833_v23 = vadd.s32 3, %v469_v59 }
  0xd7   :  { %564 = vsinq.f32 %v354_v7  ;;  %v831_v24 = vshrl.u32 %v94_v12, 30  ;;  %v153_v30 = vor.u32 8388608, %v152_v6  ;;  %vm365_vm11 = vcmp.eq.s32.totalorder %v822_v63, 2 }
  0xd8   :  { %566 = vpow2.f32 %v264_v55  ;;  %v455_v26 = vor.u32 %v454_v18, %v453_v17  ;;  %v458_v28 = vshll.u32 %v457_v22, 23  ;;  %v162_v14 = vshll.u32 %v581_v34, %v159_v3 }
  0xd9   :  { %v96_v31 = vshll.u32 %v831_v24, 30  ;;  %v163_v32 = vshrl.u32 %v582_v36, %v160_v15  ;;  %v165_v25 = vshll.u32 %v582_v36, %v159_v3  ;;  %vm362_vm12 = vcmp.eq.s32.totalorder %v822_v63, 0 }
  0xda   :  { %v459_v37 = vor.u32 4788187, %v458_v28  ;;  %v166_v39 = vshrl.u32 %v583_v38, %v160_v15  ;;  %v168_v40 = vshll.u32 %v583_v38, %v159_v3  ;;  %v169_v57 = vshrl.u32 %v584_v43, %v160_v15 }
  0xdb   :  { %vm361_vm13 = vcmp.lt.s32.totalorder %v822_v63, 2  ;;  %v845_v55 = vsub.s32 %v93_v60, %v96_v31  ;;  %v847_v41 = vshrl.u32 %v157_v21, 5  ;;  %v171_v44 = vshll.u32 %v584_v43, %v159_v3 }
  0xdc   :  { %v172_v45 = vshrl.u32 %v585_v46, %v160_v15  ;;  %vm358_vm14 = vweird.f32 %v624_v8  ;;  %v460_v36 = vand.u32 2147483647, %v459_v37  ;;  %v462_v48 = vcvt.s32.f32 %v455_v26 }
  0xdd   :  { %v174_v35 = vshll.u32 %v585_v46, %v159_v3  ;;  %v175_v38 = vshrl.u32 %v586_v49, %v160_v15  ;;  %v89_v50 = vadd.s32 %v790_v33, %v781_v27  ;;  %v99_v51 = vsub.s32 0, %v845_v55 }
  0xde   :  { %v161_v10 = vshrl.u32 %v581_v34, %v160_v15  ;;  %v164_v4 = vor.u32 %v163_v32, %v162_v14  ;;  %v463_v52 = vmul.f32 %v462_v48, %v460_v36  ;;  %v167_v43 = vor.u32 %v166_v39, %v165_v25 }
  0xdf   :  { %v170_v42 = vor.u32 %v169_v57, %v168_v40  ;;  %v858_v53 = vshll.u32 %v153_v30, 8  ;;  %vm374_vm15 = vcmask 25601   ;;  %v519_v54 = vmin.u32 %v99_v51, %v845_v55 }
  0xe0   :  { %v563_v29 = vpop.eup %562  ;;  %v173_v46 = vor.u32 %v172_v45, %v171_v44  ;;  %vm177_vm0 = vcmp.lt.s32.totalorder %v847_v41, 1  ;;  %vm178_vm1 = vcmp.lt.s32.totalorder %v847_v41, 2  ;;  %v464_v33 = vxor.u32 2147483648, %v463_v52 }
  0xe1   :  { %v565_v49 = vpop.eup %564  ;;  %v366_v27 = vxor.u32 2147483648, %v563_v29  ;;  %v176_v19 = vor.u32 %v175_v38, %v174_v35  ;;  %vm179_vm2 = vcmp.lt.s32.totalorder %v847_v41, 3  ;;  %v101_v16 = vclz %v519_v54 }
  0xe2   :  { %v864_v34 = vpop.eup %566  ;;  %v363_v13 = vxor.u32 2147483648, %v565_v49  ;;  %vm180_vm3 = vcmp.lt.s32.totalorder %v847_v41, 4  ;;  %v181_v58 = vsel %vm177_vm0, %v161_v10, %v164_v4  ;;  %v465_v21 = vsel %vm382_vm6, %v464_v33, %v463_v52 }
  0xe3   :  { %v367_v60 = vsel %vm365_vm11, %v366_v27, %v565_v49  ;;  %v182_v61 = vsel %vm180_vm3, %v170_v42, 2102212464  ;;  %v185_v1 = vsel %vm177_vm0, %v164_v4, %v167_v43  ;;  %v468_v7 = vsel %vm810_vm8, %v629_v11, %v465_v21 }
  0xe4   :  { %v364_v3 = vsel %vm362_vm12, %v563_v29, %v363_v13  ;;  %v520_v9 = vadd.s32 4294967294, %v101_v16  ;;  %v186_v5 = vsel %vm180_vm3, %v173_v46, 920167782  ;;  %568 = vcosq.f32 %v468_v7 }
  0xe5   :  { %v368_v6 = vsel %vm361_vm13, %v364_v3, %v367_v60  ;;  %v187_v59 = vsel %vm179_vm2, %v170_v42, %v186_v5  ;;  %v189_v12 = vsel %vm177_vm0, %v167_v43, %v170_v42  ;;  %570 = vsinq.f32 %v468_v7 }
  0xe6   :  { %v369_v15 = vsel %vm358_vm14, nan, %v368_v6  ;;  %vm521_vm4 = vcmp.lt.s32.totalorder %v520_v9, 0  ;;  %v188_v2 = vsel %vm178_vm1, %v185_v1, %v187_v59  ;;  %v183_v63 = vsel %vm179_vm2, %v167_v43, %v182_v61 }
  0xe7   :  { %v371_v17 = vrot.slane %v369_v15, 7  ;;  %v104_v18 = vsel %vm521_vm4, 0, %v520_v9  ;;  %v190_v22 = vsel %vm180_vm3, %v176_v19, 1326507024  ;;  %v184_v44 = vsel %vm178_vm1, %v181_v58, %v183_v63 }
  0xe8   :  { %v105_v26 = vsub.s32 32, %v104_v18  ;;  %v106_v28 = vshll.u32 %v845_v55, %v104_v18  ;;  %v109_v30 = vsub.s32 4294967266, %v104_v18  ;;  %v191_v8 = vsel %vm179_vm2, %v173_v46, %v190_v22 }
  0xe9   :  { %v373_v31 = vmul.f32 %v864_v34, %v371_v17  ;;  %v192_v14 = vsel %vm178_vm1, %v189_v12, %v191_v8  ;;  %v905_v32 = vmul.u32.u64.low %v858_v53, %v188_v2  ;;  %v906_v25 = vmul.u32.u64.high %v858_v53, %v188_v2, %v905_v32 }
  0xea   :  { %v107_v37 = vshrl.u32 %v89_v50, %v105_v26  ;;  %v110_v39 = vadd.s32 127, %v109_v30  ;;  %v910_v40 = vmul.u32.u64.low %v858_v53, %v192_v14  ;;  %v911_v57 = vmul.u32.u64.high %v858_v53, %v192_v14, %v910_v40 }
  0xeb   :  { %v375_v55 = vsel %vm374_vm15, %v373_v31, 0.0  ;;  %v474_v48 = vand.u32 3, %v833_v23  ;;  %v203_v35 = vadd.s32 1, %v906_v25  ;;  %v200_v50 = vmul.u32 %v858_v53, %v184_v44 }
  0xec   :  { %376 = vadd.xlane.f32.xlu1 %v375_v55  ;;  %v108_v45 = vor.u32 %v107_v37, %v106_v28  ;;  %v111_v36 = vshll.u32 %v110_v39, 23  ;;  %vm202_vm5 = vc.u32 %v911_v57, %v905_v32  ;;  %v119_v23 = vsub.s32 4, %v831_v24  ;;  %v32_v28 = vld [vmem:[%s960_s0] sm:$0x1f] }
  0xed   :  { %v204_v10 = vsel %vm202_vm5, %v203_v35, %v906_v25  ;;  %vm479_vm6 = vcmp.eq.s32.totalorder %v474_v48, 2  ;;  %vm476_vm7 = vcmp.eq.s32.totalorder %v474_v48, 0  ;;  %vm472_vm8 = vweird.f32 %v629_v11 }
  0xee   :  { %v112_v38 = vor.u32 4788187, %v111_v36  ;;  %v569_v51 = vpop.eup %568  ;;  %v115_v43 = vcvt.s32.f32 %v108_v45  ;;  %v205_v42 = vadd.s32 %v204_v10, %v200_v50  ;;  %vm475_vm9 = vcmp.lt.s32.totalorder %v474_v48, 2 }
  0xef   :  { %v571_v4 = vpop.eup %570  ;;  %v480_v52 = vxor.u32 2147483648, %v569_v51  ;;  %vm35_vm10 = vcmp.lt.s32.totalorder %v637_v20, 0  ;;  %vm34_vm11 = vcmp.le.f32.partialorder %v33_v62, 0.7853982  ;;  %v201_v18 = vadd.s32 %v905_v32, %v911_v57 }
  0xf0   :  { %v113_v41 = vand.u32 2147483647, %v112_v38  ;;  %v477_v29 = vxor.u32 2147483648, %v571_v4  ;;  %v206_v49 = vadd.s32 536870912, %v205_v42  ;;  %v120_v16 = vsel %vm35_vm10, %v119_v23, %v831_v24 }
  0xf1   :  { %v481_v54 = vsel %vm479_vm6, %v480_v52, %v571_v4  ;;  %v122_v1 = vsel %vm34_vm11, 0, %v120_v16  ;;  %vm125_vm0 = vweird.f32 %v637_v20  ;;  %vm138_vm1 = vcmask 36864  }
  0xf2   :  { %v116_v46 = vmul.f32 %v115_v43, %v113_v41  ;;  %v478_v53 = vsel %vm476_vm7, %v569_v51, %v477_v29  ;;  %v207_v19 = vshrl.u32 %v206_v49, 30  ;;  %v126_v5 = vadd.s32 3, %v122_v1 }
  0xf3   :  { %v482_v27 = vsel %vm475_vm9, %v478_v53, %v481_v54  ;;  %vm147_vm2 = vcmp.lt.s32.totalorder %v748_v47, 0  ;;  %vm146_vm3 = vcmp.le.f32.partialorder %v145_v56, 0.7853982  ;;  %v522_v56 = vld [vmem:[%s960_s0 + $0x8] sm:$0x1f]  ;;  %vm237_vm7 = vweird.f32 %v748_v47 }
  0xf4   :  { %v117_v33 = vxor.u32 2147483648, %v116_v46  ;;  %v483_v13 = vsel %vm472_vm8, nan, %v482_v27  ;;  %v208_v21 = vshll.u32 %v207_v19, 30  ;;  %v127_v59 = vand.u32 3, %v126_v5 }
  0xf5   :  { %v485_v58 = vrot.slane %v483_v13, 7  ;;  %v231_v48 = vsub.s32 4, %v207_v19  ;;  %vm510_vm9 = vcmask 4096  }
  0xf6   :  { %v118_v60 = vsel %vm35_vm10, %v117_v33, %v116_v46  ;;  %v209_v3 = vsub.s32 %v205_v42, %v208_v21  ;;  %vm132_vm13 = vcmp.eq.s32.totalorder %v127_v59, 2  ;;  %vm128_vm14 = vcmp.lt.s32.totalorder %v127_v59, 2 }
  0xf7   :  { %v121_v61 = vsel %vm34_vm11, %v637_v20, %v118_v60  ;;  %v487_v11 = vmul.f32 %v864_v34, %v485_v58  ;;  %v232_v38 = vsel %vm147_vm2, %v231_v48, %v207_v19  ;;  %v500_v19 = vshrl.u32 %v254_v0, 7  ;;  %v535_v58 = vld [vmem:[%s958_s1 + $0x10] sm:$0x1f] }
  0xf8   :  { %572 = vcosq.f32 %v121_v61  ;;  %v211_v9 = vsub.s32 0, %v209_v3  ;;  %v234_v51 = vsel %vm146_vm3, 0, %v232_v38 }
  0xf9   :  { %574 = vsinq.f32 %v121_v61  ;;  %v488_v7 = vsel %vm374_vm15, %v487_v11, 0.0  ;;  %vm129_vm15 = vcmp.eq.s32.totalorder %v127_v59, 0  ;;  %v238_v10 = vadd.s32 3, %v234_v51 }
  0xfa   :  { %489 = vadd.xlane.f32.xlu1 %v488_v7  ;;  %v524_v24 = vmin.u32 %v211_v9, %v209_v3  ;;  %v506_v60 = vsub.s32 1, %v500_v19  ;;  %vm501_vm8 = vcmp.eq.s32.totalorder %v500_v19, 4 }
  0xfb   :  { %v239_v4 = vand.u32 3, %v238_v10 }
  0xfc   :  { %v213_v6 = vclz %v524_v24 }
  0xfd   :  { %vm244_vm4 = vcmp.eq.s32.totalorder %v239_v4, 2  ;;  %vm241_vm5 = vcmp.eq.s32.totalorder %v239_v4, 0  ;;  %vm240_vm6 = vcmp.lt.s32.totalorder %v239_v4, 2 }
  0xfe   :  { %v525_v12 = vadd.s32 4294967294, %v213_v6 }
 0x100   :  { %vm526_vm12 = vcmp.lt.s32.totalorder %v525_v12, 0 }
 0x101   :  { %v216_v17 = vsel %vm526_vm12, 0, %v525_v12 }
 0x102   :  { %v573_v62 = vpop.eup %572  ;;  %v217_v63 = vsub.s32 32, %v216_v17  ;;  %v221_v22 = vsub.s32 4294967266, %v216_v17  ;;  %v218_v8 = vshll.u32 %v209_v3, %v216_v17  ;;  %v587_v3 = vmov 0.0  }
 0x103   :  { %v575_v15 = vpop.eup %574  ;;  %v133_v2 = vxor.u32 2147483648, %v573_v62  ;;  %v536_v7 = vsel %vm501_vm8, 1.0, %v587_v3 }
 0x104   :  { %v130_v34 = vxor.u32 2147483648, %v575_v15  ;;  %v219_v31 = vshrl.u32 %v201_v18, %v217_v63  ;;  %v222_v14 = vadd.s32 127, %v221_v22 }
 0x105   :  { %v134_v26 = vsel %vm132_vm13, %v133_v2, %v575_v15 }
 0x106   :  { %v131_v30 = vsel %vm129_vm15, %v573_v62, %v130_v34  ;;  %v220_v39 = vor.u32 %v219_v31, %v218_v8  ;;  %v223_v32 = vshll.u32 %v222_v14, 23 }
 0x107   :  { %v135_v25 = vsel %vm128_vm14, %v131_v30, %v134_v26 }
 0x108   :  { %v136_v37 = vsel %vm125_vm0, nan, %v135_v25  ;;  %v224_v57 = vor.u32 4788187, %v223_v32  ;;  %v227_v45 = vcvt.s32.f32 %v220_v39 }
 0x109   :  { %v137_v40 = vmul.f32 %v136_v37, %v32_v28 }
 0x10a   :  { %v225_v44 = vand.u32 2147483647, %v224_v57 }
 0x10b   :  { %v139_v55 = vsel %vm138_vm1, %v137_v40, 0.0 }
 0x10c   :  { %140 = vadd.xlane.f32.xlu1 %v139_v55  ;;  %v228_v36 = vmul.f32 %v227_v45, %v225_v44 }
 0x10e   :  { %v229_v35 = vxor.u32 2147483648, %v228_v36 }
 0x110   :  { %v230_v20 = vsel %vm147_vm2, %v229_v35, %v228_v36 }
 0x111   :  { %v233_v50 = vsel %vm146_vm3, %v748_v47, %v230_v20  ;;  %v495_v47 = vld [vmem:[%s958_s1] sm:$0x1f] }
 0x112   :  { %576 = vcosq.f32 %v233_v50  ;;  %v496_v11 = vadd.f32 %v535_v58, %v495_v47 }
 0x113   :  { %578 = vsinq.f32 %v233_v50 }
 0x11c   :  { %v577_v52 = vpop.eup %576 }
 0x11d   :  { %v579_v41 = vpop.eup %578  ;;  %v245_v43 = vxor.u32 2147483648, %v577_v52 }
 0x11e   :  { %v242_v42 = vxor.u32 2147483648, %v579_v41 }
 0x11f   :  { %v246_v29 = vsel %vm244_vm4, %v245_v43, %v579_v41 }
 0x120   :  { %v243_v23 = vsel %vm241_vm5, %v577_v52, %v242_v42 }
 0x121   :  { %v247_v54 = vsel %vm240_vm6, %v243_v23, %v246_v29 }
 0x122   :  { %v248_v46 = vsel %vm237_vm7, nan, %v247_v54 }
 0x123   :  { %v249_v49 = vmul.f32 %v522_v56, %v248_v46 }
 0x125   :  { %v250_v53 = vsel %vm138_vm1, %v249_v49, 0.0 }
 0x126   :  { %251 = vadd.xlane.f32.xlu1 %v250_v53 }
 0x179   :  { %v377_v27 = vpop.xlane.xlu1 %376 }
 0x17a   :  { %v378_v16 = vmul.f32 0.8, %v377_v27 }
 0x187   :  { %v490_v33 = vpop.xlane.xlu1 %489 }
 0x188   :  { %v491_v13 = vmul.f32 0.4, %v490_v33 }
 0x18a   :  { %v492_v21 = vadd.f32 %v491_v13, %v378_v16 }
 0x18c   :  { %v507_v1 = vrot.slane %v492_v21, %v506_v60 }
 0x18e   :  { %v508_v5 = vmul.f32 %v536_v7, %v507_v1 }
 0x199   :  { %v141_v61 = vpop.xlane.xlu1 %140 }
 0x19a   :  { %v497_v9 = vsub.f32 %v496_v11, %v141_v61 }
 0x1b3   :  { %v252_v0 = vpop.xlane.xlu1 %251 }
 0x1b4   :  { %v498_v24 = vsub.f32 %v497_v9, %v252_v0 }
 0x1b6   :  { %v509_v6 = vsub.f32 %v498_v24, %v508_v5 }
 0x1b8   :  { %511 = vst.msk [vmem:[%s961_s4] sm:$0x1f] %vm510_vm9, %v509_v6 }

</bundles_post_ra>
